<compile_context>
chip_gen: v5e
topology: v5e:2x2
jax: 0.10.0
libtpu: 0.0.40
codegen_flags: <defaults>
</compile_context>

<pallas_src>
import functools

import jax
import jax.numpy as jnp
from jax.experimental import pallas as pl
from jax.experimental.pallas import tpu as pltpu

_BN_EPS = 1e-5
_PACK = 4          # logical rows packed per physical row
_ROW_ALIGN = 128   # row padding / tile granularity (keeps all blocks tiled-aligned)


def _stats_kernel(x_ref, w1_ref, b1_ref, stats_ref, *,
                  pack, hidden, tile_p, n_rows, mask_rows):
    """Pass 1: per-tile partial sum / sum-of-squares of relu(x @ W1 + b1).

    x_ref is the 4-row-packed input (tile_p, pack*in_dim); w1_ref is the
    block-diagonal W1, so lanes [g*hidden:(g+1)*hidden] of h hold the hidden
    features of logical row 4*p + g.
    """
    h = jnp.dot(x_ref[...], w1_ref[...], preferred_element_type=jnp.float32)
    h = jnp.maximum(h + b1_ref[...], 0.0)
    if mask_rows:
        # Mask zero-padded rows and the undefined rows of a ragged last tile
        # out of the statistics.  Logical row of element (p, lane) is
        # 4*(tile_off + p) + lane // hidden; instead of a vector int division
        # we mask lanes below a per-physical-row threshold.
        sub = jax.lax.broadcasted_iota(jnp.int32, h.shape, 0)
        lane = jax.lax.broadcasted_iota(jnp.int32, h.shape, 1)
        base = (pl.program_id(0) * tile_p + sub) * pack   # first logical row in this physical row
        valid_lanes = jnp.clip(n_rows - base, 0, pack) * hidden
        h = jnp.where(lane < valid_lanes, h, 0.0)
    s = jnp.sum(h, axis=0, keepdims=True)
    ss = jnp.sum(h * h, axis=0, keepdims=True)
    stats_ref[...] = jnp.concatenate([s, ss], axis=0)[None]   # one store


def _main_kernel(x_ref, *rest, residual):
    """Pass 2: Linear1+ReLU -> (BN folded into W2') Linear2+ReLU -> Linear3 (+residual).

    All operands are 4-row packed; weights are block-diagonal.
    """
    if residual:
        (ea_ref, w1_ref, b1_ref, w2_ref, b2_ref, w3_ref, b3_ref, out_ref) = rest
    else:
        (w1_ref, b1_ref, w2_ref, b2_ref, w3_ref, b3_ref, out_ref) = rest

    h = jnp.dot(x_ref[...], w1_ref[...], preferred_element_type=jnp.float32)
    h = jnp.maximum(h + b1_ref[...], 0.0)
    # BatchNorm is folded into w2_ref / b2_ref (done in f32 in the wrapper).
    h = jnp.dot(h.astype(jnp.bfloat16), w2_ref[...],
                preferred_element_type=jnp.float32) + b2_ref[...]
    h = jnp.maximum(h, 0.0)
    out = jnp.dot(h.astype(jnp.bfloat16), w3_ref[...],
                  preferred_element_type=jnp.float32) + b3_ref[...]
    if residual:
        out = out + ea_ref[...]          # edge_attr kept in f32 -> exact residual
    out_ref[...] = out.astype(out_ref.dtype)


def edge_block_forward(pos_src, ang_src, pos_dest, ang_dest, edge_attr, params,
                       residual=True, max_tile_e=8192):
    E, edge_dim = edge_attr.shape
    pos_dim = pos_src.shape[1]
    ang_dim = ang_src.shape[1]
    hidden = params["w2"].shape[0]
    in_dim = 2 * (pos_dim + ang_dim) + edge_dim

    # ---- wrapper-side prep (all fused by XLA) -------------------------------
    # One fused cast+concat -> Linear1 becomes a single K=in_dim dot.
    x = jnp.concatenate([pos_src, ang_src, edge_attr, pos_dest, ang_dest],
                        axis=1).astype(jnp.bfloat16)
    ea = edge_attr.astype(jnp.float32)   # residual term stays f32

    # Pad rows to a multiple of 128 so the packed views / tiles are aligned.
    E_pad = ((E + _ROW_ALIGN - 1) // _ROW_ALIGN) * _ROW_ALIGN
    if E_pad != E:
        x = jnp.pad(x, ((0, E_pad - E), (0, 0)))
        ea = jnp.pad(ea, ((0, E_pad - E), (0, 0)))

    # Free row-major views: 4 logical rows per physical row.
    xp = x.reshape(E_pad // _PACK, _PACK * in_dim)
    eap = ea.reshape(E_pad // _PACK, _PACK * edge_dim)

    # Block-diagonal (4-packed) weights; biases tiled along lanes.
    eye = jnp.eye(_PACK, dtype=jnp.float32)
    w1_f32 = params["w1"].astype(jnp.float32)
    w2_f32 = params["w2"].astype(jnp.float32)
    w3_f32 = params["w3"].astype(jnp.float32)
    w1_bd = jnp.kron(eye, w1_f32).astype(jnp.bfloat16)          # (4*in_dim, 4*hidden)
    w2_bd_f32 = jnp.kron(eye, w2_f32)                           # (4*hidden, 4*hidden), f32 for BN fold
    w3_bd = jnp.kron(eye, w3_f32).astype(jnp.bfloat16)          # (4*hidden, 4*edge_dim)
    b1_bd = jnp.tile(params["b1"].reshape(1, hidden).astype(jnp.float32), (1, _PACK))
    b2_bd = jnp.tile(params["b2"].reshape(1, hidden).astype(jnp.float32), (1, _PACK))
    b3_bd = jnp.tile(params["b3"].reshape(1, edge_dim).astype(jnp.float32), (1, _PACK))
    gamma = params["gamma"].reshape(hidden).astype(jnp.float32)
    beta = params["beta"].reshape(hidden).astype(jnp.float32)

    # ---- row tiling ----------------------------------------------------------
    assert max_tile_e % _ROW_ALIGN == 0, "max_tile_e must be a multiple of 128"
    if E_pad <= max_tile_e:
        if E_pad >= 2 * _ROW_ALIGN:
            # Guarantee >=2 row tiles so the "parallel" axis can shard across
            # the 2 TensorCores on v7x; near-free on single-TC v5e/v6e.
            tile_e = ((E_pad // 2 + _ROW_ALIGN - 1) // _ROW_ALIGN) * _ROW_ALIGN
        else:
            tile_e = E_pad
    else:
        tile_e = max_tile_e
    tile_p = tile_e // _PACK
    n_tiles = (E_pad + tile_e - 1) // tile_e
    mask_rows = (n_tiles * tile_e != E)   # padded / ragged rows exist

    x_spec = pl.BlockSpec((tile_p, _PACK * in_dim), lambda i: (i, 0))
    ea_spec = pl.BlockSpec((tile_p, _PACK * edge_dim), lambda i: (i, 0))

    def const_spec(a):
        # Constant block index -> parameter is DMA'd once and stays VMEM-resident.
        return pl.BlockSpec(a.shape, lambda i, _nd=a.ndim: (0,) * _nd)

    cparams = pltpu.CompilerParams(
        dimension_semantics=("parallel",),
        vmem_limit_bytes=32 * 1024 * 1024,
    )

    # ---- Pass 1: per-tile partial BN statistics -----------------------------
    stats = pl.pallas_call(
        functools.partial(_stats_kernel, pack=_PACK, hidden=hidden,
                          tile_p=tile_p, n_rows=E, mask_rows=mask_rows),
        out_shape=jax.ShapeDtypeStruct((n_tiles, 2, _PACK * hidden), jnp.float32),
        grid=(n_tiles,),
        in_specs=[x_spec, const_spec(w1_bd), const_spec(b1_bd)],
        out_specs=pl.BlockSpec((1, 2, _PACK * hidden), lambda i: (i, 0, 0)),
        compiler_params=cparams,
    )(xp, w1_bd, b1_bd)

    # ---- Finalize BatchNorm (train mode, biased var) and fold into W2/b2 ----
    tot = jnp.sum(stats, axis=0)                      # (2, 4*hidden)
    tot = tot.reshape(2, _PACK, hidden).sum(axis=1)   # sum the 4 lane-groups -> (2, hidden)
    mean = tot[0] / E
    var = jnp.maximum(tot[1] / E - mean * mean, 0.0)
    bn_scale = gamma * jax.lax.rsqrt(var + _BN_EPS)   # (hidden,)
    bn_shift = beta - mean * bn_scale
    scale_t = jnp.tile(bn_scale, _PACK)               # (4*hidden,) matches packed lane layout
    shift_t = jnp.tile(bn_shift, _PACK)
    # Fold in f32, then cast: bn(h) @ W2 + b2 == h @ (diag(scale) W2) + (shift @ W2 + b2)
    w2_bd = (scale_t[:, None] * w2_bd_f32).astype(jnp.bfloat16)
    b2_bd_folded = (shift_t @ w2_bd_f32).reshape(1, -1) + b2_bd

    # ---- Pass 2: full MLP with folded BN, tiled + row-parallel --------------
    in_specs = [x_spec]
    args = [xp]
    if residual:
        in_specs.append(ea_spec)
        args.append(eap)
    in_specs += [const_spec(w1_bd), const_spec(b1_bd), const_spec(w2_bd),
                 const_spec(b2_bd_folded), const_spec(w3_bd), const_spec(b3_bd)]
    args += [w1_bd, b1_bd, w2_bd, b2_bd_folded, w3_bd, b3_bd]

    out_packed = pl.pallas_call(
        functools.partial(_main_kernel, residual=bool(residual)),
        out_shape=jax.ShapeDtypeStruct((E_pad // _PACK, _PACK * edge_dim), jnp.float32),
        grid=(n_tiles,),
        in_specs=in_specs,
        out_specs=pl.BlockSpec((tile_p, _PACK * edge_dim), lambda i: (i, 0)),
        compiler_params=cparams,
    )(*args)

    # Free views back to (E, edge_dim); drop padded rows.
    return out_packed.reshape(E_pad, edge_dim)[:E]


def edge_block_reference(pos_src, ang_src, pos_dest, ang_dest, edge_attr,
                         params, residual=True):
    """Pure-JAX f32 reference matching the PyTorch module (train-mode BN)."""
    x = jnp.concatenate([pos_src, ang_src, edge_attr, pos_dest, ang_dest],
                        axis=1).astype(jnp.float32)
    h = jnp.maximum(x @ params["w1"] + params["b1"], 0.0)
    mean = jnp.mean(h, axis=0, keepdims=True)
    var = jnp.mean((h - mean) ** 2, axis=0, keepdims=True)
    h = (h - mean) * jax.lax.rsqrt(var + _BN_EPS) * params["gamma"] + params["beta"]
    h = jnp.maximum(h @ params["w2"] + params["b2"], 0.0)
    out = h @ params["w3"] + params["b3"]
    if residual:
        out = out + edge_attr
    return out


def init_params(key, pos_dim, ang_dim, edge_dim, hidden_dim):
    node_dim = pos_dim + ang_dim
    in_dim = 2 * node_dim + edge_dim
    ks = jax.random.split(key, 6)

    def linear(kw, kb, fan_in, fan_out):
        bound = 1.0 / jnp.sqrt(fan_in)
        w = jax.random.uniform(kw, (fan_in, fan_out), jnp.float32, -bound, bound)
        b = jax.random.uniform(kb, (1, fan_out), jnp.float32, -bound, bound)
        return w, b

    w1, b1 = linear(ks[0], ks[1], in_dim, hidden_dim)
    w2, b2 = linear(ks[2], ks[3], hidden_dim, hidden_dim)
    w3, b3 = linear(ks[4], ks[5], hidden_dim, edge_dim)
    gamma = jnp.ones((1, hidden_dim), jnp.float32)   # BatchNorm1d default affine init
    beta = jnp.zeros((1, hidden_dim), jnp.float32)
    return dict(w1=w1, b1=b1, gamma=gamma, beta=beta,
                w2=w2, b2=b2, w3=w3, b3=b3)


if __name__ == "__main__":
    pos_dim, ang_dim, edge_dim, hidden_dim = 3, 4, 8, 32
    E = 200  # not a multiple of 128 -> exercises padding, ragged tile + masking

    key = jax.random.PRNGKey(0)
    k_in, k_par = jax.random.split(key)
    kp = jax.random.split(k_in, 5)
    pos_src = jax.random.normal(kp[0], (E, pos_dim), jnp.float32)
    ang_src = jax.random.normal(kp[1], (E, ang_dim), jnp.float32)
    pos_dest = jax.random.normal(kp[2], (E, pos_dim), jnp.float32)
    ang_dest = jax.random.normal(kp[3], (E, ang_dim), jnp.float32)
    edge_attr = jax.random.normal(kp[4], (E, edge_dim), jnp.float32)

    params = init_params(k_par, pos_dim, ang_dim, edge_dim, hidden_dim)

    for res in (True, False):
        out = edge_block_forward(pos_src, ang_src, pos_dest, ang_dest, edge_attr,
                                 params, residual=res)
        jax.block_until_ready(out)
        assert out.shape == (E, edge_dim)
        ref = edge_block_reference(pos_src, ang_src, pos_dest, ang_dest, edge_attr,
                                   params, residual=res)
        err = float(jnp.max(jnp.abs(out - ref)))
        assert err < 2e-1, f"residual={res}: max abs error vs f32 reference too large: {err}"

    print("KERNEL_OK")
</pallas_src>

<mosaic_0001>
module attributes {stable_mosaic.version = 11 : i64} {
  func.func @_stats_kernel(%arg0: i32, %arg1: memref<32x88xbf16, #tpu.memory_space<vmem>>, %arg2: memref<88x128xbf16, #tpu.memory_space<vmem>>, %arg3: memref<1x128xf32, #tpu.memory_space<vmem>>, %arg4: memref<1x2x128xf32, #tpu.memory_space<vmem>>) attributes {dimension_semantics = [#tpu.dimension_semantics<parallel>], iteration_bounds = array<i64: 2>, scalar_prefetch = 0 : i64, scratch_operands = 0 : i64, tpu.core_type = #tpu.core_type<tc>, window_params = [{transform_indices = @transform_0, window_bounds = array<i64: 32, 88>}, {pipeline_mode = #tpu.pipeline_mode<synchronous>, transform_indices = @transform_1, window_bounds = array<i64: 88, 128>}, {pipeline_mode = #tpu.pipeline_mode<synchronous>, transform_indices = @transform_2, window_bounds = array<i64: 1, 128>}, {transform_indices = @transform_3, window_bounds = array<i64: 1, 2, 128>}]} {
    %c0 = arith.constant 0 : index
    %c0_0 = arith.constant 0 : index
    %0 = vector.load %arg1[%c0, %c0_0] : memref<32x88xbf16, #tpu.memory_space<vmem>>, vector<32x88xbf16>
    %c0_1 = arith.constant 0 : index
    %c0_2 = arith.constant 0 : index
    %1 = vector.load %arg2[%c0_1, %c0_2] : memref<88x128xbf16, #tpu.memory_space<vmem>>, vector<88x128xbf16>
    %cst = arith.constant dense<0.000000e+00> : vector<32x128xf32>
    %2 = tpu.matmul %0, %1, %cst {dimension_numbers = #tpu.dot_dimension_numbers<[1], [0], [0], [1], [0, 0, 1, 1], [], []>} : vector<32x88xbf16>, vector<88x128xbf16>, vector<32x128xf32> -> vector<32x128xf32>
    %c0_3 = arith.constant 0 : index
    %c0_4 = arith.constant 0 : index
    %3 = vector.load %arg3[%c0_3, %c0_4] : memref<1x128xf32, #tpu.memory_space<vmem>>, vector<1x128xf32>
    %4 = vector.broadcast %3 : vector<1x128xf32> to vector<32x128xf32>
    %5 = arith.addf %2, %4 : vector<32x128xf32>
    %cst_5 = arith.constant 0.000000e+00 : f32
    %6 = vector.broadcast %cst_5 : f32 to vector<32x128xf32>
    %7 = arith.maximumf %5, %6 : vector<32x128xf32>
    %8 = tpu.iota {dimensions = array<i32: 0>} : vector<32x128xi32>
    %9 = tpu.iota {dimensions = array<i32: 1>} : vector<32x128xi32>
    %c32_i32 = arith.constant 32 : i32
    %10 = arith.muli %arg0, %c32_i32 : i32
    %11 = vector.broadcast %10 : i32 to vector<32x128xi32>
    %12 = arith.addi %11, %8 : vector<32x128xi32>
    %c4_i32 = arith.constant 4 : i32
    %13 = vector.broadcast %c4_i32 : i32 to vector<32x128xi32>
    %14 = arith.muli %12, %13 : vector<32x128xi32>
    %c200_i32 = arith.constant 200 : i32
    %15 = vector.broadcast %c200_i32 : i32 to vector<32x128xi32>
    %16 = arith.subi %15, %14 : vector<32x128xi32>
    %c0_i32 = arith.constant 0 : i32
    %c4_i32_6 = arith.constant 4 : i32
    %17 = vector.broadcast %c0_i32 : i32 to vector<32x128xi32>
    %18 = arith.maxsi %17, %16 : vector<32x128xi32>
    %19 = vector.broadcast %c4_i32_6 : i32 to vector<32x128xi32>
    %20 = arith.minsi %19, %18 : vector<32x128xi32>
    %c32_i32_7 = arith.constant 32 : i32
    %21 = vector.broadcast %c32_i32_7 : i32 to vector<32x128xi32>
    %22 = arith.muli %20, %21 : vector<32x128xi32>
    %23 = arith.cmpi slt, %9, %22 : vector<32x128xi32>
    %cst_8 = arith.constant 0.000000e+00 : f32
    %24 = vector.broadcast %cst_8 : f32 to vector<32x128xf32>
    %25 = arith.select %23, %7, %24 : vector<32x128xi1>, vector<32x128xf32>
    %cst_9 = arith.constant dense<0.000000e+00> : vector<128xf32>
    %26 = vector.multi_reduction <add>, %25, %cst_9 [0] : vector<32x128xf32> to vector<128xf32>
    %27 = vector.shape_cast %26 : vector<128xf32> to vector<1x128xf32>
    %28 = arith.mulf %25, %25 : vector<32x128xf32>
    %cst_10 = arith.constant dense<0.000000e+00> : vector<128xf32>
    %29 = vector.multi_reduction <add>, %28, %cst_10 [0] : vector<32x128xf32> to vector<128xf32>
    %30 = vector.shape_cast %29 : vector<128xf32> to vector<1x128xf32>
    %31 = tpu.concatenate %27, %30 in 0 : vector<1x128xf32>, vector<1x128xf32> -> vector<2x128xf32>
    %32 = vector.shape_cast %31 : vector<2x128xf32> to vector<1x2x128xf32>
    %c0_11 = arith.constant 0 : index
    %c0_12 = arith.constant 0 : index
    %c0_13 = arith.constant 0 : index
    %33 = vector.load %arg4[%c0_11, %c0_12, %c0_13] : memref<1x2x128xf32, #tpu.memory_space<vmem>>, vector<1x2x128xf32>
    tpu.vector_store %arg4[%c0_11, %c0_12, %c0_13], %32 {strides = array<i32>} : memref<1x2x128xf32, #tpu.memory_space<vmem>>, vector<1x2x128xf32>,
    return
  }
  func.func @transform_0(%arg0: i32) -> (i32, i32) {
    %c0_i32 = arith.constant 0 : i32
    %c0_i32_0 = arith.constant 0 : i32
    return %arg0, %c0_i32 : i32, i32
  }
  func.func @transform_1(%arg0: i32) -> (i32, i32) {
    %c0_i32 = arith.constant 0 : i32
    %c0_i32_0 = arith.constant 0 : i32
    %c0_i32_1 = arith.constant 0 : i32
    return %c0_i32, %c0_i32_0 : i32, i32
  }
  func.func @transform_2(%arg0: i32) -> (i32, i32) {
    %c0_i32 = arith.constant 0 : i32
    %c0_i32_0 = arith.constant 0 : i32
    %c0_i32_1 = arith.constant 0 : i32
    return %c0_i32, %c0_i32_0 : i32, i32
  }
  func.func @transform_3(%arg0: i32) -> (i32, i32, i32) {
    %c0_i32 = arith.constant 0 : i32
    %c0_i32_0 = arith.constant 0 : i32
    %c0_i32_1 = arith.constant 0 : i32
    return %arg0, %c0_i32, %c0_i32_0 : i32, i32, i32
  }
}

</mosaic_0001>

<bundles_post_ra>
// kernel: tpu_custom_call.1
= control target key start
LH: loop header
LB: loop body
LE: loop exit
PB: predicated region body
PF: predicated region fallthrough
CT: control target
= control target key end

     0   :  { %8 = vsyncpa [#allocation3], 0  ;;  %s900_s0 = inlined_call_operand.hbm [shape: bf16[64,88], index: 0, kind: input, shape index: {}]   ;;  %s901_s1 = inlined_call_operand.hbm [shape: bf16[88,128], index: 1, kind: input, shape index: {}]   ;;  %s902_s2 = inlined_call_operand.vmem [shape: f32[1,128], index: 2, kind: input, shape index: {}]   ;;  %s903_s3 = inlined_call_operand.hbm [shape: f32[2,2,128], index: 3, kind: output, shape index: {}]  }
   0x1   :  { %10 = vsyncpa [#allocation3 + $0x1], 0 }
   0x2   :  { %11 = vsyncpa [#allocation6], 0 }
   0x3   :  { %12 = vsyncpa [#allocation4], 0 }
   0x4   :  { %14 = vsyncpa [#allocation4 + $0x1], 0  ;;  %s751_s12 = smov 0   ;;  %s753_s13 = smov 0  }
   0x5   :  { %s755_s14 = smov 0   ;;  %s757_s15 = smov 0  }
   0x6 LB: > { %s772_s16 = sadd.s32 4294967295, %s726_s15   ;;  %s476_s17 = sadd.s32 4294967294, %s726_s15   ;;  %s726_s15 = sphi %s757_s15, %s913_s15   ;;  %s722_s14 = sphi %s755_s14, %s912_s14   ;;  %s718_s13 = sphi %s753_s13, %s911_s13   ;;  %s714_s12 = sphi %s751_s12, %s910_s12  }
   0x7   : > { %p40_p0 = scmp.ne.s32.totalorder %s718_s13, %s714_s12  ;;  %p41_p1 = scmp.eq.s32.totalorder %s772_s16, 0 }
   0x8   : > { %p106_p2 = scmp.eq.s32.totalorder %s772_s16, 1  ;;  %p112_p3 = scmp.eq.s32.totalorder %s476_s17, 1 }
   0x9   : > { %p781_p4 = por %p41_p1, %p40_p0  ;;  %p477_p5 = scmp.ge.s32.totalorder %s726_s15, 1 }
   0xa   : > { %p786_p6 = por %p112_p3, %p40_p0  ;;  %p119_p7 = scmp.lt.s32.totalorder %s726_s15, 3 }
   0xb   : > { %s130_s22 = sshll.u32 %s901_s1, 4  ;;  %s728_s24 = smov [#allocation5]   ;;  %s131_s22 = int_to_ptr.hbm [resolvable:$true] %s130_s22 }
   0xc   : > { %p794_p8 = pnand %p477_p5, %p119_p7  ;;  %s132_s25 = sshll.u32 %s728_s24, 4  ;;  %s133_s25 = int_to_ptr.vmem [resolvable:$true] %s132_s25 }
   0xd   : > { %s804_s26 = sadd.s32 1, %s726_s15   ;;  %s729_s27 = smov 64  }
   0xe   : > { %p544_p9 = pneg %p794_p8  ;;  %s730_s28 = smov 4  }
   0xf   : > { %s24_s29 = ssub.s32 %s726_s15, %s804_s26  ;;  %s27_s30 = sadd.s32 1, %s722_s14 }
  0x10   : > { %p545_p10 = pnand %p544_p9, %p41_p1  ;;  %p25_p12 = scmp.eq.s32.totalorder %s24_s29, 0 }
  0x11   : > { %p34_p13 = scmp.ne.s32.totalorder %s722_s14, %s718_s13  ;;  %p35_p0 = scmp.eq.s32.totalorder %s726_s15, 0 }
  0x12   : > { %547 = dma.hbm_to_vmem [thread:$0]  (!%p545_p10), %s131_s22, 704, %s133_s25, [#allocation6], %s729_s27, %s729_s27, %s730_s28  }
  0x13   : > { %s816_s4 = scalar_select %p25_p12, %s722_s14, %s27_s30  }
  0x14   : > { %p820_p3 = por %p106_p2, %p34_p13  ;;  %p557_p5 = scmp.lt.s32.totalorder %s726_s15, 2 }
  0x15   : > { %s149_s6 = sand.u32 1, %s722_s14   ;;  %s522_s7 = sshll.u32 %s726_s15, 4 }
  0x16   : > { %p36_p7 = por %p35_p0, %p34_p13  ;;  %s480_s8 = sshll.u32 %s149_s6, 4 }
  0x17   : > { %s158_s11 = scalar_lea.hbm %s900_s0, %s522_s7  ;;  %s153_s20 = scalar_lea.vmem [#allocation2], %s480_s8 }
  0x18   : > { %s159_s17 = sshll.u32 %s158_s11, 4  ;;  %s161_s21 = sshll.u32 %s153_s20, 4  ;;  %s160_s17 = int_to_ptr.hbm [resolvable:$true] %s159_s17  ;;  %s162_s21 = int_to_ptr.vmem [resolvable:$true] %s161_s21 }
  0x19   : > { %p830_p9 = pnand %p557_p5, %p36_p7  ;;  %s150_s24 = scalar_lea.sflag [#allocation3], %s149_s6 }
  0x1a   : > { %s626_s25 = sshra.s32 %s160_s17, 4  ;;  %s633_s8 = scalar_lea.hbm %s900_s0, 32  ;;  %s627_s25 = int_to_ptr.hbm [resolvable:$true] %s626_s25 }
  0x1b   : > { %s628_s29 = scalar_lea.hbm %s627_s25, 16  ;;  %p630_p10 = pneg %p830_p9 }
  0x1c   : > { %p629_p2 = scmp.ne.s32.totalorder %s627_s25, %s628_s29  ;;  %p634_p0 = scmp.lt.s32.totalorder %s627_s25, %s900_s0 }
  0x1d   : > { %p635_p5 = scmp.lt.s32.totalorder %s633_s8, %s628_s29 }
  0x1e   : > { %p631_p12 = pnand %p630_p10, %p629_p2 }
  0x1f   : > { %p636_p7 = por %p635_p5, %p634_p0 }
  0x20   : > { %p632_p13 = pneg %p631_p12 }
  0x22   : > { %p637_p11 = pnand %p636_p7, %p632_p13 }
  0x24   : > { %640 = shalt.err (!%p637_p11)
}
  0x25   : > { %551 = dma.hbm_to_vmem [thread:$0]  (!%p830_p9), %s160_s17, 256, %s162_s21, %s150_s24, %s729_s27, %s729_s27, %s730_s28  }
  0x26   : > { %173 = sbr.rel (%p794_p8) target bundleno = 238 (0xee), region = 32  ;;  %s850_s6 = sand.u32 (!%p794_p8), 1, %s718_s13  }
  0x27   : > { %s484_s11 = sshll.u32 (!%p794_p8), %s850_s6, 4  ;;  %s176_s20 = scalar_lea.sflag (!%p794_p8), [#allocation3], %s850_s6 }
  0x28   : > { %s179_s25 = scalar_lea.vmem (!%p794_p8), [#allocation2], %s484_s11 }
  0x2b   : > { %701 = dma.done.wait (%p781_p4), %s176_s20, 256  }
  0x2c   : > { %703 = vsyncadd (%p781_p4), %s176_s20, 4294967040 }
  0x2d   : > { %705 = dma.done.wait (%p41_p1), [#allocation6], 704  }
  0x2e   : > { %707 = vsyncadd (%p41_p1), [#allocation6], 4294966592  ;;  %v224_v0 = vld [vmem:[#allocation5 + $0x28] sm:$0xf]  ;;  %vm279_vm0 = vcmask 1043456   ;;  %v529_v4 = vld [vmem:[#allocation5 + $0x20] sm:$0xff]  ;;  %v306_v11 = vlaneseq }
  0x2f   : > { %v260_v1 = vunpack.c.l.b16 %v224_v0  ;;  %v528_v5 = vld [vmem:[#allocation5 + $0x18] sm:$0xff]  ;;  %v527_v6 = vld [vmem:[#allocation5 + $0x10] sm:$0xff]  ;;  %v526_v7 = vld [vmem:[#allocation5 + $0x8] sm:$0xff]  ;;  %vm272_vm1 = vcmask 719872   ;;  %s517_s18 = sshll.u32 %s772_s16, 5  ;;  %s486_s28 = sshll.u32 %s850_s6, 1 }
  0x30   : > { %v525_v8 = vld [vmem:[#allocation5] sm:$0xff]  ;;  %v524_v10 = vld [vmem:[%s179_s25 + $0x8] sm:$0xff]  ;;  %v307_v12 = vshrl.u32 %v306_v11, 7  ;;  %v314_v13 = vstv %s517_s18  ;;  %v312_v40 = vand.u32 127, %v306_v11  ;;  %s519_s17 = sshll.u32 %s772_s16, 1  ;;  %s207_s29 = scalar_lea.vmem [#allocation7], %s486_s28 }
  0x31   : > { %v266_v2 = vpack.c.b16 %v260_v1, %v260_v1  ;;  %v523_v9 = vld [vmem:[%s179_s25] sm:$0xff]  ;;  %s391_s24 = scalar_lea.hbm %s903_s3, %s519_s17  ;;  %s393_s30 = sshll.u32 %s207_s29, 4  ;;  %vm377_vm14 = vcmask 1040384   ;;  %s394_s30 = int_to_ptr.vmem [resolvable:$true] %s393_s30 }
  0x32   : > { %v309_v14 = vadd.s32 16, %v307_v12  ;;  %v308_v15 = vadd.s32 8, %v307_v12  ;;  %v315_v16 = vadd.s32 %v314_v13, %v307_v12  ;;  %v310_v17 = vadd.s32 24, %v307_v12  ;;  %v595_v32 = vld [vmem:[%s902_s2] ss:$0 sm:$0xff]  ;;  %s395_s7 = sshll.u32 %s391_s24, 4  ;;  %s396_s7 = int_to_ptr.hbm [resolvable:$true] %s395_s7 }
  0x33   : > { %v281_v3 = vsel %vm279_vm0, %v266_v2, 0  ;;  %s381_s16 = scalar_lea.sflag [#allocation4], %s850_s6  ;;  %s670_s8 = sshra.s32 %s396_s7, 4  ;;  %s671_s8 = int_to_ptr.hbm [resolvable:$true] %s670_s8 }
  0x34   : > { %285 = vmatpush.bf16.msra.mxu0 %v281_v3  ;;  %530 = vmatpush.bf16.msra.mxu1 %v281_v3  ;;  %v317_v18 = vadd.s32 %v314_v13, %v309_v14  ;;  %v316_v19 = vadd.s32 %v314_v13, %v308_v15  ;;  %v319_v20 = vmul.u32 4, %v315_v16  ;;  %v318_v21 = vadd.s32 %v314_v13, %v310_v17  ;;  %s672_s9 = scalar_lea.hbm %s671_s8, 2  ;;  %s676_s20 = scalar_lea.hbm %s903_s3, 4 }
  0x35   : > { %p673_p1 = scmp.ne.s32.totalorder %s671_s8, %s672_s9  ;;  %p677_p11 = scmp.lt.s32.totalorder %s671_s8, %s903_s3 }
  0x36   : > { %v321_v22 = vmul.u32 4, %v317_v18  ;;  %v320_v23 = vmul.u32 4, %v316_v19  ;;  %v323_v24 = vsub.s32 200, %v319_v20  ;;  %v322_v25 = vmul.u32 4, %v318_v21  ;;  %p678_p9 = scmp.lt.s32.totalorder %s676_s20, %s672_s9 }
  0x37   : > { %p674_p4 = pnand %p673_p1, %p820_p3 }
  0x38   : > { %286 = vmatpush.bf16.msra.mxu0 %v529_v4  ;;  %531 = vmatpush.bf16.msra.mxu1 %v529_v4  ;;  %v325_v26 = vsub.s32 200, %v321_v22  ;;  %v324_v27 = vsub.s32 200, %v320_v23  ;;  %vm327_vm2 = vcmp.gt.s32.totalorder %v323_v24, 0  ;;  %v326_v28 = vsub.s32 200, %v322_v25  ;;  %p679_p2 = por %p678_p9, %p677_p11 }
  0x39   : > { %v328_v29 = vsel %vm327_vm2, %v323_v24, 0  ;;  %p675_p8 = pneg %p674_p4 }
  0x3a   : > { %vm331_vm3 = vcmp.gt.s32.totalorder %v325_v26, 0  ;;  %vm329_vm4 = vcmp.gt.s32.totalorder %v324_v27, 0  ;;  %vm333_vm5 = vcmp.gt.s32.totalorder %v326_v28, 0  ;;  %vm335_vm6 = vcmp.lt.s32.totalorder %v328_v29, 4 }
  0x3b   : > { %v332_v30 = vsel %vm331_vm3, %v325_v26, 0  ;;  %v330_v31 = vsel %vm329_vm4, %v324_v27, 0  ;;  %v334_v33 = vsel %vm333_vm5, %v326_v28, 0  ;;  %v336_v36 = vsel %vm335_vm6, %v328_v29, 4  ;;  %p680_p10 = pnand %p679_p2, %p675_p8 }
  0x3c   : > { %287 = vmatpush.bf16.msra.mxu0 %v528_v5  ;;  %532 = vmatpush.bf16.msra.mxu1 %v528_v5  ;;  %vm339_vm7 = vcmp.lt.s32.totalorder %v332_v30, 4  ;;  %vm337_vm8 = vcmp.lt.s32.totalorder %v330_v31, 4  ;;  %vm341_vm9 = vcmp.lt.s32.totalorder %v334_v33, 4  ;;  %v343_v41 = vmul.u32 32, %v336_v36 }
  0x3d   : > { %v340_v38 = vsel %vm339_vm7, %v332_v30, 4  ;;  %v338_v39 = vsel %vm337_vm8, %v330_v31, 4  ;;  %v342_v43 = vsel %vm341_vm9, %v334_v33, 4 }
  0x3e   : > { %v345_v44 = vmul.u32 32, %v340_v38  ;;  %v344_v45 = vmul.u32 32, %v338_v39  ;;  %vm347_vm10 = vcmp.lt.s32.totalorder %v312_v40, %v343_v41  ;;  %v346_v49 = vmul.u32 32, %v342_v43 }
  0x40   : > { %288 = vmatpush.bf16.msra.mxu0 %v527_v6  ;;  %533 = vmatpush.bf16.msra.mxu1 %v527_v6  ;;  %vm349_vm11 = vcmp.lt.s32.totalorder %v312_v40, %v345_v44  ;;  %vm348_vm12 = vcmp.lt.s32.totalorder %v312_v40, %v344_v45  ;;  %vm350_vm13 = vcmp.lt.s32.totalorder %v312_v40, %v346_v49 }
  0x44   : > { %289 = vmatpush.bf16.msra.mxu0 %v526_v7  ;;  %534 = vmatpush.bf16.msra.mxu1 %v526_v7 }
  0x48   : > { %290 = vmatpush.bf16.msra.mxu0 %v525_v8  ;;  %535 = vmatpush.bf16.msra.mxu1 %v525_v8 }
  0x4b   : > { %515 = vmatmul.msk.bf16.vlgmr.msra.gmra.mxu0 %vm272_vm1, %v523_v9  ;;  %516 = vmatmul.msk.bf16.vlgmr.msra.gmra.mxu1 %vm272_vm1, %v524_v10 }
  0xc8   : > { %v292_v34 = vpop.f32.mrf.mxu0  ;;  %v297_v35 = vpop.f32.mrf.mxu1 }
  0xc9   : > { %v293_v37 = vadd.f32 %v595_v32, %v292_v34  ;;  %v298_v42 = vadd.f32 %v595_v32, %v297_v35 }
  0xcb   : > { %v302_v46 = vmax.f32 %v293_v37, 0.0  ;;  %v304_v50 = vmax.f32 %v298_v42, 0.0 }
  0xcd   : > { %v351_v53 = vsel %vm347_vm10, %v302_v46, 0.0  ;;  %v353_v56 = vsel %vm349_vm11, %v304_v50, 0.0 }
  0xce   : > { %v364_v58 = vmul.f32 %v351_v53, %v351_v53  ;;  %v366_v62 = vmul.f32 %v353_v56, %v353_v56 }
  0xd0   : > { %v294_v47 = vpop.f32.mrf.mxu0  ;;  %v299_v48 = vpop.f32.mrf.mxu1 }
  0xd1   : > { %v295_v51 = vadd.f32 %v595_v32, %v294_v47  ;;  %v300_v52 = vadd.f32 %v595_v32, %v299_v48 }
  0xd3   : > { %v303_v54 = vmax.f32 %v295_v51, 0.0  ;;  %v305_v55 = vmax.f32 %v300_v52, 0.0 }
  0xd5   : > { %v352_v57 = vsel %vm348_vm12, %v303_v54, 0.0  ;;  %v354_v61 = vsel %vm350_vm13, %v305_v55, 0.0 }
  0xd6   : > { %v355_v59 = vadd.f32 %v352_v57, %v351_v53  ;;  %v365_v60 = vmul.f32 %v352_v57, %v352_v57  ;;  %v367_v2 = vmul.f32 %v354_v61, %v354_v61 }
  0xd8   : > { %v368_v63 = vadd.f32 %v365_v60, %v364_v58  ;;  %v356_v0 = vadd.f32 %v355_v59, %v353_v56 }
  0xda   : > { %v357_v1 = vadd.f32 %v356_v0, %v354_v61  ;;  %v369_v3 = vadd.f32 %v368_v63, %v366_v62 }
  0xdc   : > { %v358_v4 = vrot.slane %v357_v1, 4  ;;  %v370_v5 = vadd.f32 %v369_v3, %v367_v2 }
  0xde   : > { %v359_v6 = vadd.f32 %v358_v4, %v357_v1  ;;  %v371_v7 = vrot.slane %v370_v5, 4 }
  0xe0   : > { %v360_v8 = vrot.slane %v359_v6, 2  ;;  %v372_v9 = vadd.f32 %v371_v7, %v370_v5 }
  0xe2   : > { %v361_v10 = vadd.f32 %v360_v8, %v359_v6  ;;  %v373_v11 = vrot.slane %v372_v9, 2 }
  0xe4   : > { %v362_v12 = vrot.slane %v361_v10, 1  ;;  %v374_v13 = vadd.f32 %v373_v11, %v372_v9 }
  0xe6   : > { %v375_v14 = vrot.slane %v374_v13, 1  ;;  %v363_v15 = vadd.f32 %v362_v12, %v361_v10 }
  0xe8   : > { %v376_v16 = vadd.f32 %v375_v14, %v374_v13 }
  0xea   : > { %v378_v17 = vsel %vm377_vm14, %v363_v15, %v376_v16 }
  0xeb   : > { %379 = vst [vmem:[%s207_s29] sm:$0x3] %v378_v17 }
  0xec   : > { %683 = shalt.err (!%p680_p10)
}
  0xed   : > { %542 = dma.vmem_to_hbm [thread:$0]  (%p820_p3), %s394_s30, 32, %s396_s7, %s381_s16  }
  0xee PF: > { %s407_s6 = sand.u32 1, %s714_s12   ;;  %p909_p12 = scmp.ge.s32.totalorder %s726_s15, 2 }
  0xef   : > { %s408_s23 = scalar_lea.sflag [#allocation4], %s407_s6 }
  0xf0   : > { %p553_p13 = pnand %p909_p12, %p786_p6 }
  0xf2   : > { %p554_p0 = pneg %p553_p13 }
  0xf4   : > { %709 = dma.done.wait (%p554_p0), %s408_s23, 32  }
  0xf5   : > { %711 = vsyncadd (%p554_p0), %s408_s23, 4294967264  ;;  %p17_p5 = scmp.ge.s32.totalorder %s804_s26, 4   ;;  %s910_s12 = smov %s718_s13 }
  0xf6   : > { %s911_s13 = smov %s722_s14  ;;  %s912_s14 = smov %s816_s4 }
  0xf7   : > { %s913_s15 = smov %s804_s26  ;;  %19 = sbr.rel (!%p17_p5) target bundleno = 6 (0x6), region = 81 }
  0xfc   :  { %414 = vsyncpa [#allocation3], 1 }
  0xfd   :  { %416 = vsyncpa [#allocation3 + $0x1], 1 }
  0xfe   :  { %417 = vsyncpa [#allocation6], 1 }
  0xff   :  { %418 = vsyncpa [#allocation4], 1 }
 0x100   :  { %420 = vsyncpa [#allocation4 + $0x1], 1 }

</bundles_post_ra>
